<compile_context>
chip_gen: v7x
topology: tpu7x:2x2x1
jax: 0.10.0
libtpu: 0.0.40
codegen_flags: <defaults>
</compile_context>

<pallas_src>
import functools

import numpy as np
import jax
import jax.numpy as jnp
from jax.experimental import pallas as pl
from jax.experimental.pallas import tpu as pltpu


# ----------------------------------------------------------------------------
# Host-side construction of the banded DoG operators (mirrors plenoptic filters)
# ----------------------------------------------------------------------------
def _circular_gaussian2d(kernel_size, std, out_channels):
    """JAX port of plenoptic.circular_gaussian2d -> (out_channels, 1, kH, kW),
    each filter normalized to sum to 1. Used only for the reference check."""
    kH, kW = kernel_size
    std = jnp.broadcast_to(jnp.asarray(std, jnp.float32).reshape(-1), (out_channels,))
    origin_y = (kH + 1) / 2.0
    origin_x = (kW + 1) / 2.0
    shift_y = jnp.arange(1, kH + 1, dtype=jnp.float32) - origin_y
    shift_x = jnp.arange(1, kW + 1, dtype=jnp.float32) - origin_x
    yy, xx = jnp.meshgrid(shift_y, shift_x, indexing="ij")
    d2 = yy ** 2 + xx ** 2
    g = jnp.exp(-d2[None, :, :] / (2.0 * std[:, None, None] ** 2))
    g = g / jnp.sum(g, axis=(1, 2), keepdims=True)
    return g[:, None, :, :]


def make_center_surround_filter(kernel_size, on_center, amplitude_ratio,
                                center_std, surround_std):
    """Module-style 2D filter: amp * sign * (gauss(center) - gauss(surround))."""
    out_channels = len(on_center)
    filt_center = _circular_gaussian2d(kernel_size, center_std, out_channels)
    filt_surround = _circular_gaussian2d(kernel_size, surround_std, out_channels)
    sign = jnp.asarray([1.0 if oc else -1.0 for oc in on_center], jnp.float32)
    sign = sign.reshape(out_channels, 1, 1, 1)
    return jnp.float32(amplitude_ratio) * (sign * (filt_center - filt_surround))


def _reflect_index(i, n):
    """numpy/PyTorch 'reflect' padding index (no edge repeat), n > 1."""
    if n == 1:
        return 0
    period = 2 * (n - 1)
    i = i % period
    return i if i < n else period - i


def make_dog_operators(H, W, kernel_size, on_center, amplitude_ratio,
                       center_std, surround_std):
    """Banded blur matrices (with reflect padding folded in) + combine coeffs.

    For the G *unique* Gaussian stds across channels, builds
        By  : (G, H, H)   vertical 1D blur (rows of the image)
        BxT : (G, W, W)   horizontal 1D blur, pre-transposed for right-multiply
    such that blur_g = By[g] @ x @ BxT[g] exactly equals the 2D cross-correlation
    of x (reflect same_padding) with the normalized circular Gaussian of std g.
    coeff (O, G) combines the shared blurs into each DoG output channel:
        out[o] = sum_g coeff[o, g] * blur_g
              == amp * sign[o] * (gauss(center_std[o]) - gauss(surround_std[o])) * x.
    """
    kH, kW = kernel_size
    O = len(on_center)
    c_std = np.broadcast_to(np.asarray(center_std, np.float64).reshape(-1), (O,)).copy()
    s_std = np.broadcast_to(np.asarray(surround_std, np.float64).reshape(-1), (O,)).copy()
    uniq = np.unique(np.concatenate([c_std, s_std]))   # shared stds -> one blur each
    G = len(uniq)

    def gauss1d(n, std):
        shift = np.arange(1, n + 1, dtype=np.float64) - (n + 1) / 2.0
        g = np.exp(-shift ** 2 / (2.0 * std ** 2))
        return g / g.sum()

    # plenoptic same_padding (stride=1, dilation=1): pad_before = (k-1)//2.
    padb_h = (kH - 1) // 2
    padb_w = (kW - 1) // 2
    By = np.zeros((G, H, H), np.float32)
    BxT = np.zeros((G, W, W), np.float32)
    for g, std in enumerate(uniq):
        wy = gauss1d(kH, std)
        wx = gauss1d(kW, std)
        for h in range(H):
            for i in range(kH):
                By[g, h, _reflect_index(h + i - padb_h, H)] += wy[i]
        for w in range(W):
            for j in range(kW):
                BxT[g, _reflect_index(w + j - padb_w, W), w] += wx[j]

    amp = float(np.asarray(amplitude_ratio))
    coeff = np.zeros((O, G), np.float32)
    for o in range(O):
        sgn = 1.0 if on_center[o] else -1.0
        coeff[o, int(np.searchsorted(uniq, c_std[o]))] += amp * sgn   # center Gaussian
        coeff[o, int(np.searchsorted(uniq, s_std[o]))] -= amp * sgn   # surround Gaussian
    return jnp.asarray(By), jnp.asarray(BxT), coeff


# ----------------------------------------------------------------------------
# Pallas kernel: MXU banded-matrix DoG, all out-channels per grid step
# ----------------------------------------------------------------------------
def _cs_dog_kernel(x_ref, by_ref, bxT_ref, o_ref, *, coeff):
    # x_ref   : VMEM (1, H, W)     raw (unpadded) image of current batch element
    # by_ref  : VMEM (G, Ht, H)    vertical banded blur rows for this H-tile
    # bxT_ref : VMEM (G, W, W)     horizontal banded blur (transposed)
    # o_ref   : VMEM (1, O, Ht, W) output tile
    # coeff   : Python tuple-of-tuples (O, G) combine coefficients (closure consts)
    G = len(coeff[0])
    O = len(coeff)
    x = x_ref[0]                                                     # (H, W)

    # Two MXU matmuls per unique Gaussian; reflect padding is inside By/BxT.
    blurs = []
    for g in range(G):
        v = jnp.dot(by_ref[g], x, preferred_element_type=jnp.float32)        # (Ht, W)
        blurs.append(jnp.dot(v, bxT_ref[g], preferred_element_type=jnp.float32))

    # Single store per output channel; reuse the negated combination when a
    # channel's coefficients are the exact negation of an earlier one (default
    # on-center/off-center pair).
    computed = []   # list of (coeff_row, value)
    for o in range(O):
        row = coeff[o]
        val = None
        for prow, pval in computed:
            if all(a == -b for a, b in zip(row, prow)):
                val = -pval
                break
        if val is None:
            val = row[0] * blurs[0]
            for g in range(1, G):
                val = val + row[g] * blurs[g]
            computed.append((row, val))
        o_ref[0, o] = val.astype(o_ref.dtype)


def center_surround_forward(x, By, BxT, coeff, *, block_h=256):
    """Pallas equivalent of CenterSurround.forward(x) (reflect same_padding + conv2d)."""
    B, C, H, W = x.shape
    assert C == 1, "CenterSurround convolves a single-channel input (in_channels == 1)"
    G = By.shape[0]
    O = coeff.shape[0]

    x2 = x[:, 0].astype(jnp.float32)          # (B, H, W) -- no host-side padding copy

    # H-tiling: no halo blocks needed (By rows carry the vertical footprint).
    Ht = H if H <= block_h else block_h       # block_h is a multiple of 8
    n_ht = pl.cdiv(H, Ht)

    coeff_t = tuple(tuple(float(c) for c in row) for row in np.asarray(coeff))

    # Explicit VMEM budget from the chosen blocks (double-buffered) + headroom.
    in_block = H * W * 4
    by_block = G * Ht * H * 4
    bx_block = G * W * W * 4
    out_block = O * Ht * W * 4
    vmem_bytes = 2 * (in_block + by_block + bx_block + out_block) + (2 << 20)
    vmem_limit = int(min(max(vmem_bytes, 32 << 20), 100 << 20))

    # NOTE: for tiny demo widths (W < 128) output stores are lane-masked; real
    # images with W a multiple of 128 get lane-dense stores for free.
    kernel = functools.partial(_cs_dog_kernel, coeff=coeff_t)
    out = pl.pallas_call(
        kernel,
        out_shape=jax.ShapeDtypeStruct((B, O, H, W), jnp.float32),
        grid=(B, n_ht),
        in_specs=[
            pl.BlockSpec((1, H, W), lambda b, t: (b, 0, 0)),     # image (resident across t)
            pl.BlockSpec((G, Ht, H), lambda b, t: (0, t, 0)),    # vertical band rows of tile t
            pl.BlockSpec((G, W, W), lambda b, t: (0, 0, 0)),     # horizontal band (shared)
        ],
        out_specs=pl.BlockSpec((1, O, Ht, W), lambda b, t: (b, 0, t, 0)),
        compiler_params=pltpu.CompilerParams(
            dimension_semantics=("parallel", "parallel"),        # megacore over (B, H-tiles)
            vmem_limit_bytes=vmem_limit),
    )(x2, By.astype(jnp.float32), BxT.astype(jnp.float32))
    return out


# ----------------------------------------------------------------------------
# Pure-JAX reference (module-style dense 2D conv, for correctness check)
# ----------------------------------------------------------------------------
def _reference_forward(x, filt, pad_mode="reflect"):
    B, _, H, W = x.shape
    O, _, kH, kW = filt.shape
    pad_h, pad_w = kH - 1, kW - 1
    x_pad = jnp.pad(
        x[:, 0],
        ((0, 0), (pad_h // 2, pad_h - pad_h // 2), (pad_w // 2, pad_w - pad_w // 2)),
        mode=pad_mode,
    ).astype(jnp.float32)
    out = jnp.zeros((B, O, H, W), jnp.float32)
    for i in range(kH):
        for j in range(kW):
            win = x_pad[:, i:i + H, j:j + W]                     # (B, H, W)
            out = out + filt[None, :, 0, i, j, None, None] * win[:, None]
    return out


if __name__ == "__main__":
    # Module config: CenterSurround(kernel_size=8, on_center=[True, False],
    #                               amplitude_ratio=1.25, center_std=1.0, surround_std=4.0)
    kernel_size = (8, 8)
    on_center = [True, False]          # -> out_channels = 2
    amplitude_ratio = 1.25
    center_std = 1.0
    surround_std = 4.0

    key = jax.random.PRNGKey(0)
    B, H, W = 2, 16, 16
    x = jax.random.normal(key, (B, 1, H, W), dtype=jnp.float32)   # NCHW, 1 input channel

    By, BxT, coeff = make_dog_operators(H, W, kernel_size, on_center,
                                        amplitude_ratio, center_std, surround_std)

    y = center_surround_forward(x, By, BxT, coeff)
    y = jax.block_until_ready(y)

    # Reference path: module-style 2D DoG filter + dense cross-correlation.
    filt = make_center_surround_filter(kernel_size, on_center, amplitude_ratio,
                                       center_std, surround_std)   # (2, 1, 8, 8)
    y_ref = _reference_forward(x, filt)

    assert y.shape == (B, len(on_center), H, W)
    assert jnp.allclose(y, y_ref, atol=1e-5, rtol=1e-5)

    print("KERNEL_OK")
</pallas_src>

<mosaic_0001>
module attributes {stable_mosaic.version = 11 : i64} {
  func.func @_cs_dog_kernel(%arg0: i32, %arg1: i32, %arg2: memref<1x16x16xf32, #tpu.memory_space<vmem>>, %arg3: memref<2x16x16xf32, #tpu.memory_space<vmem>>, %arg4: memref<2x16x16xf32, #tpu.memory_space<vmem>>, %arg5: memref<1x2x16x16xf32, #tpu.memory_space<vmem>>) attributes {dimension_semantics = [#tpu.dimension_semantics<parallel>, #tpu.dimension_semantics<parallel>], iteration_bounds = array<i64: 2, 1>, scalar_prefetch = 0 : i64, scratch_operands = 0 : i64, tpu.core_type = #tpu.core_type<tc>, window_params = [{transform_indices = @transform_0, window_bounds = array<i64: 1, 16, 16>}, {transform_indices = @transform_1, window_bounds = array<i64: 2, 16, 16>}, {pipeline_mode = #tpu.pipeline_mode<synchronous>, transform_indices = @transform_2, window_bounds = array<i64: 2, 16, 16>}, {transform_indices = @transform_3, window_bounds = array<i64: 1, 2, 16, 16>}]} {
    %c0 = arith.constant 0 : index
    %c0_0 = arith.constant 0 : index
    %c0_1 = arith.constant 0 : index
    %0 = vector.load %arg2[%c0, %c0_0, %c0_1] : memref<1x16x16xf32, #tpu.memory_space<vmem>>, vector<1x16x16xf32>
    %1 = vector.shape_cast %0 : vector<1x16x16xf32> to vector<16x16xf32>
    %c0_2 = arith.constant 0 : index
    %c0_3 = arith.constant 0 : index
    %c0_4 = arith.constant 0 : index
    %2 = vector.load %arg3[%c0_2, %c0_3, %c0_4] : memref<2x16x16xf32, #tpu.memory_space<vmem>>, vector<1x16x16xf32>
    %3 = vector.shape_cast %2 : vector<1x16x16xf32> to vector<16x16xf32>
    %cst = arith.constant dense<0.000000e+00> : vector<16x16xf32>
    %4 = tpu.matmul %3, %1, %cst {dimension_numbers = #tpu.dot_dimension_numbers<[1], [0], [0], [1], [0, 0, 1, 1], [], []>} : vector<16x16xf32>, vector<16x16xf32>, vector<16x16xf32> -> vector<16x16xf32>
    %c0_5 = arith.constant 0 : index
    %c0_6 = arith.constant 0 : index
    %c0_7 = arith.constant 0 : index
    %5 = vector.load %arg4[%c0_5, %c0_6, %c0_7] : memref<2x16x16xf32, #tpu.memory_space<vmem>>, vector<1x16x16xf32>
    %6 = vector.shape_cast %5 : vector<1x16x16xf32> to vector<16x16xf32>
    %cst_8 = arith.constant dense<0.000000e+00> : vector<16x16xf32>
    %7 = tpu.matmul %4, %6, %cst_8 {dimension_numbers = #tpu.dot_dimension_numbers<[1], [0], [0], [1], [0, 0, 1, 1], [], []>} : vector<16x16xf32>, vector<16x16xf32>, vector<16x16xf32> -> vector<16x16xf32>
    %c1 = arith.constant 1 : index
    %c0_9 = arith.constant 0 : index
    %c0_10 = arith.constant 0 : index
    %8 = vector.load %arg3[%c1, %c0_9, %c0_10] : memref<2x16x16xf32, #tpu.memory_space<vmem>>, vector<1x16x16xf32>
    %9 = vector.shape_cast %8 : vector<1x16x16xf32> to vector<16x16xf32>
    %cst_11 = arith.constant dense<0.000000e+00> : vector<16x16xf32>
    %10 = tpu.matmul %9, %1, %cst_11 {dimension_numbers = #tpu.dot_dimension_numbers<[1], [0], [0], [1], [0, 0, 1, 1], [], []>} : vector<16x16xf32>, vector<16x16xf32>, vector<16x16xf32> -> vector<16x16xf32>
    %c1_12 = arith.constant 1 : index
    %c0_13 = arith.constant 0 : index
    %c0_14 = arith.constant 0 : index
    %11 = vector.load %arg4[%c1_12, %c0_13, %c0_14] : memref<2x16x16xf32, #tpu.memory_space<vmem>>, vector<1x16x16xf32>
    %12 = vector.shape_cast %11 : vector<1x16x16xf32> to vector<16x16xf32>
    %cst_15 = arith.constant dense<0.000000e+00> : vector<16x16xf32>
    %13 = tpu.matmul %10, %12, %cst_15 {dimension_numbers = #tpu.dot_dimension_numbers<[1], [0], [0], [1], [0, 0, 1, 1], [], []>} : vector<16x16xf32>, vector<16x16xf32>, vector<16x16xf32> -> vector<16x16xf32>
    %cst_16 = arith.constant 1.250000e+00 : f32
    %14 = vector.broadcast %cst_16 : f32 to vector<16x16xf32>
    %15 = arith.mulf %14, %7 : vector<16x16xf32>
    %cst_17 = arith.constant -1.250000e+00 : f32
    %16 = vector.broadcast %cst_17 : f32 to vector<16x16xf32>
    %17 = arith.mulf %16, %13 : vector<16x16xf32>
    %18 = arith.addf %15, %17 : vector<16x16xf32>
    %c0_18 = arith.constant 0 : index
    %c0_19 = arith.constant 0 : index
    %c0_20 = arith.constant 0 : index
    %c0_21 = arith.constant 0 : index
    %19 = vector.load %arg5[%c0_18, %c0_19, %c0_20, %c0_21] : memref<1x2x16x16xf32, #tpu.memory_space<vmem>>, vector<1x1x16x16xf32>
    %20 = vector.shape_cast %19 : vector<1x1x16x16xf32> to vector<16x16xf32>
    %21 = vector.shape_cast %18 : vector<16x16xf32> to vector<1x1x16x16xf32>
    tpu.vector_store %arg5[%c0_18, %c0_19, %c0_20, %c0_21], %21 {strides = array<i32>} : memref<1x2x16x16xf32, #tpu.memory_space<vmem>>, vector<1x1x16x16xf32>,
    %cst_22 = arith.constant 0.000000e+00 : f32
    %22 = vector.broadcast %cst_22 : f32 to vector<16x16xf32>
    %23 = arith.subf %22, %18 : vector<16x16xf32>
    %c0_23 = arith.constant 0 : index
    %c1_24 = arith.constant 1 : index
    %c0_25 = arith.constant 0 : index
    %c0_26 = arith.constant 0 : index
    %24 = vector.load %arg5[%c0_23, %c1_24, %c0_25, %c0_26] : memref<1x2x16x16xf32, #tpu.memory_space<vmem>>, vector<1x1x16x16xf32>
    %25 = vector.shape_cast %24 : vector<1x1x16x16xf32> to vector<16x16xf32>
    %26 = vector.shape_cast %23 : vector<16x16xf32> to vector<1x1x16x16xf32>
    tpu.vector_store %arg5[%c0_23, %c1_24, %c0_25, %c0_26], %26 {strides = array<i32>} : memref<1x2x16x16xf32, #tpu.memory_space<vmem>>, vector<1x1x16x16xf32>,
    return
  }
  func.func @transform_0(%arg0: i32, %arg1: i32) -> (i32, i32, i32) {
    %c0_i32 = arith.constant 0 : i32
    %c0_i32_0 = arith.constant 0 : i32
    %c0_i32_1 = arith.constant 0 : i32
    return %arg0, %c0_i32, %c0_i32_0 : i32, i32, i32
  }
  func.func @transform_1(%arg0: i32, %arg1: i32) -> (i32, i32, i32) {
    %c0_i32 = arith.constant 0 : i32
    %c0_i32_0 = arith.constant 0 : i32
    %c0_i32_1 = arith.constant 0 : i32
    return %c0_i32, %arg1, %c0_i32_0 : i32, i32, i32
  }
  func.func @transform_2(%arg0: i32, %arg1: i32) -> (i32, i32, i32) {
    %c0_i32 = arith.constant 0 : i32
    %c0_i32_0 = arith.constant 0 : i32
    %c0_i32_1 = arith.constant 0 : i32
    %c0_i32_2 = arith.constant 0 : i32
    return %c0_i32, %c0_i32_0, %c0_i32_1 : i32, i32, i32
  }
  func.func @transform_3(%arg0: i32, %arg1: i32) -> (i32, i32, i32, i32) {
    %c0_i32 = arith.constant 0 : i32
    %c0_i32_0 = arith.constant 0 : i32
    %c0_i32_1 = arith.constant 0 : i32
    return %arg0, %c0_i32, %arg1, %c0_i32_0 : i32, i32, i32, i32
  }
}

</mosaic_0001>

<bundles_post_ra>
// kernel: tpu_custom_call.1
= control target key start
LH: loop header
LB: loop body
LE: loop exit
PB: predicated region body
PF: predicated region fallthrough
CT: control target
= control target key end

     0   :  { %8 = vsyncpa [#allocation3], 0  ;;  %s1370_s0 = inlined_call_operand.hbm [shape: f32[2,16,16], index: 0, kind: input, shape index: {}]   ;;  %s1371_s1 = inlined_call_operand.hbm [shape: f32[2,16,16], index: 1, kind: input, shape index: {}]   ;;  %s1372_s2 = inlined_call_operand.hbm [shape: f32[2,16,16], index: 2, kind: input, shape index: {}]   ;;  %s1373_s3 = inlined_call_operand.hbm [shape: f32[2,2,16,16], index: 3, kind: output, shape index: {}]  }
   0x1   :  { %10 = vsyncpa [#allocation3 + $0x1], 0 }
   0x2   :  { %11 = vsyncpa [#allocation6], 0 }
   0x3   :  { %12 = vsyncpa [#allocation4], 0 }
   0x4   :  { %14 = vsyncpa [#allocation4 + $0x1], 0  ;;  %s1093_s12 = smov 0   ;;  %s1095_s13 = smov 0  }
   0x5   :  { %s1097_s14 = smov 0   ;;  %s1099_s15 = smov 0  }
   0x6   :  { %s1101_s16 = smov 0   ;;  %s1103_s17 = smov 0  }
   0x7 LB: > { %s713_s18 = sadd.s32 4294967295, %s1063_s17   ;;  %s714_s19 = sadd.s32 4294967294, %s1063_s17   ;;  %s1063_s17 = sphi %s1103_s17, %s20_s17   ;;  %s1059_s16 = sphi %s1101_s16, %s1395_s16   ;;  %s1055_s15 = sphi %s1099_s15, %s1394_s15   ;;  %s1051_s14 = sphi %s1097_s14, %s1393_s14   ;;  %s1047_s13 = sphi %s1095_s13, %s1392_s13   ;;  %s1043_s12 = sphi %s1093_s12, %s1391_s12  }
   0x8   : > { %p52_p0 = scmp.ne.s32.totalorder %s1047_s13, %s1043_s12  ;;  %p1127_p1 = scmp.eq.s32.totalorder %s713_s18, 0 }
   0x9   : > { %p1131_p2 = scmp.eq.s32.totalorder %s713_s18, 1  ;;  %p131_p3 = scmp.eq.s32.totalorder %s714_s19, 1 }
   0xa   : > { %s1378_s20 = scalar_select %p1127_p1, 1, 0 }
   0xb   : > { %p1137_p4 = por %p1127_p1, %p52_p0  ;;  %p715_p5 = scmp.ge.s32.totalorder %s1063_s17, 1 }
   0xc   : > { %p1142_p6 = por %p131_p3, %p52_p0  ;;  %p138_p7 = scmp.lt.s32.totalorder %s1063_s17, 3 }
   0xd   : > { %s1380_s22 = scalar_select %p1137_p4, 1, 0 }
   0xe   : > { %s1381_s23 = scalar_select %p1142_p6, 1, 0 }
   0xf   : > { %p1147_p8 = pnand %p715_p5, %p138_p7  ;;  %s1065_s25 = smov [#allocation5]  }
  0x10   : > { %s153_s26 = sshll.u32 %s1065_s25, 4  ;;  %s1066_s28 = smov [#allocation7]   ;;  %s1151_s26 = int_to_ptr.vmem [resolvable:$true] %s153_s26 }
  0x11   : > { %p816_p9 = pneg %p1147_p8  ;;  %s166_s29 = sshll.u32 %s1066_s28, 4  ;;  %s1162_s29 = int_to_ptr.vmem [resolvable:$true] %s166_s29 }
  0x12   : > { %s891_s5 = scalar_lea.hbm %s1371_s1, 512 }
  0x13   : > { %p1158_p11 = pnand %p816_p9, %p1127_p1  ;;  %p892_p12 = scmp.ne.s32.totalorder %s1371_s1, %s891_s5 }
  0x14   : > { %p898_p5 = scmp.lt.u32.totalorder %s891_s5, %s1371_s1 }
  0x15   : > { %p893_p13 = pneg %p1158_p11 }
  0x17   : > { %p894_p0 = pnand %p893_p13, %p892_p12 }
  0x19   : > { %p895_p3 = pneg %p894_p0 }
  0x1b   : > { %p900_p7 = pnand %p898_p5, %p895_p3 }
  0x1d   : > { %903 = shalt.err (!%p900_p7)
}
  0x1e   : > { %s904_s10 = scalar_lea.vmem %s1151_s26, 512  ;;  %p912_p1 = scmp.lt.s32.totalorder %s1151_s26, %s1151_s26 }
  0x1f   : > { %p905_p9 = scmp.ne.s32.totalorder %s1151_s26, %s904_s10  ;;  %p913_p12 = scmp.lt.s32.totalorder %s904_s10, %s904_s10 }
  0x21   : > { %p907_p10 = pnand %p905_p9, %p893_p13  ;;  %p914_p0 = por %p913_p12, %p912_p1 }
  0x23   : > { %p908_p6 = pneg %p907_p10 }
  0x25   : > { %p915_p4 = pnand %p914_p0, %p908_p6 }
  0x27   : > { %918 = shalt.err (!%p915_p4)
}
  0x28   : > { %s1067_s11 = smov 128   ;;  %s1068_s18 = smov 8  }
  0x29   : > { %819 = dma.hbm_to_vmem [thread:$0]  (!%p1158_p11), %s1371_s1, 512, %s1151_s26, [#allocation6], %s1067_s11, %s1067_s11, %s1068_s18  }
  0x2a   : > { %s919_s4 = scalar_lea.hbm %s1372_s2, 512 }
  0x2b   : > { %p920_p1 = scmp.ne.s32.totalorder %s1372_s2, %s919_s4  ;;  %p926_p10 = scmp.lt.u32.totalorder %s919_s4, %s1372_s2 }
  0x2d   : > { %p922_p4 = pnand %p920_p1, %p893_p13 }
  0x2f   : > { %p923_p6 = pneg %p922_p4 }
  0x31   : > { %p928_p3 = pnand %p926_p10, %p923_p6 }
  0x33   : > { %931 = shalt.err (!%p928_p3)
}
  0x34   : > { %s932_s26 = scalar_lea.vmem %s1162_s29, 512  ;;  %p940_p12 = scmp.lt.s32.totalorder %s1162_s29, %s1162_s29 }
  0x35   : > { %p933_p5 = scmp.ne.s32.totalorder %s1162_s29, %s932_s26  ;;  %p941_p0 = scmp.lt.s32.totalorder %s932_s26, %s932_s26 }
  0x37   : > { %p935_p7 = pnand %p933_p5, %p893_p13  ;;  %p942_p1 = por %p941_p0, %p940_p12 }
  0x39   : > { %p936_p9 = pneg %p935_p7 }
  0x3b   : > { %p943_p4 = pnand %p942_p1, %p936_p9 }
  0x3d   : > { %946 = shalt.err (!%p943_p4)
}
  0x3e   : > { %822 = dma.hbm_to_vmem [thread:$0]  (!%p1158_p11), %s1372_s2, 512, %s1162_s29, [#allocation6], %s1067_s11, %s1067_s11, %s1068_s18  }
  0x3f   : > { %s32_s27 = sadd.s32 1, %s1059_s16  ;;  %s39_s19 = sadd.s32 1, %s1051_s14 }
  0x40   : > { %p34_p13 = scmp.ge.s32.totalorder %s32_s27, 2  ;;  %p46_p6 = scmp.ne.s32.totalorder %s1051_s14, %s1047_s13 }
  0x41   : > { %p47_p10 = scmp.eq.s32.totalorder %s1063_s17, 0  ;;  %p833_p3 = scmp.lt.s32.totalorder %s1063_s17, 2 }
  0x42   : > { %s1397_s27 = smov (%p34_p13, %s32_s27), 0  ;;  %p1232_p7 = por %p1131_p2, %p46_p6 }
  0x43   : > { %p48_p5 = por %p47_p10, %p46_p6  ;;  %s36_s28 = ssub.s32 %s1059_s16, %s1397_s27 }
  0x44   : > { %s1384_s25 = scalar_select %p1232_p7, 1, 0 }
  0x45   : > { %s180_s30 = sand.u32 1, %s1051_s14   ;;  %p37_p9 = scmp.eq.s32.totalorder %s36_s28, 0 }
  0x46   : > { %s719_s29 = sshll.u32 %s180_s30, 4  ;;  %s742_s4 = sshll.u32 %s1059_s16, 8 }
  0x47   : > { %s1241_s5 = scalar_select %p37_p9, %s1051_s14, %s39_s19  }
  0x48   : > { %s1246_s8 = scalar_lea.hbm %s1370_s0, %s742_s4  ;;  %s184_s21 = scalar_lea.vmem [#allocation2], %s719_s29 }
  0x49   : > { %s191_s26 = sshll.u32 %s184_s21, 4  ;;  %p1250_p2 = pnand %p833_p3, %p48_p5  ;;  %s1254_s26 = int_to_ptr.vmem [resolvable:$true] %s191_s26 }
  0x4a   : > { %s1256_s10 = scalar_lea.sflag [#allocation3], %s180_s30  ;;  %s947_s19 = scalar_lea.hbm %s1246_s8, 256 }
  0x4b   : > { %p948_p11 = scmp.ne.s32.totalorder %s1246_s8, %s947_s19  ;;  %p949_p12 = pneg %p1250_p2 }
  0x4c   : > { %s952_s4 = scalar_lea.hbm %s1370_s0, 512  ;;  %p953_p4 = scmp.lt.u32.totalorder %s1246_s8, %s1370_s0 }
  0x4d   : > { %p950_p0 = pnand %p949_p12, %p948_p11  ;;  %p954_p13 = scmp.lt.u32.totalorder %s952_s4, %s947_s19 }
  0x4e   : > { %p956_p10 = scmp.lt.u32.totalorder %s947_s19, %s1246_s8 }
  0x4f   : > { %p951_p1 = pneg %p950_p0  ;;  %p955_p6 = por %p954_p13, %p953_p4 }
  0x51   : > { %p957_p3 = por %p956_p10, %p955_p6 }
  0x53   : > { %p958_p5 = pnand %p957_p3, %p951_p1 }
  0x55   : > { %961 = shalt.err (!%p958_p5)
}
  0x56   : > { %s962_s30 = scalar_lea.vmem %s1254_s26, 256  ;;  %s1069_s21 = smov [#allocation2]  }
  0x57   : > { %p963_p9 = scmp.ne.s32.totalorder %s1254_s26, %s962_s30  ;;  %s967_s28 = sshll.u32 %s1069_s21, 4  ;;  %s968_s28 = int_to_ptr.vmem [resolvable:$false] %s967_s28 }
  0x58   : > { %s969_s29 = scalar_lea.vmem %s968_s28, 512  ;;  %p970_p7 = scmp.lt.s32.totalorder %s1254_s26, %s968_s28 }
  0x59   : > { %p965_p11 = pnand %p963_p9, %p949_p12  ;;  %p971_p4 = scmp.lt.s32.totalorder %s969_s29, %s962_s30 }
  0x5b   : > { %p966_p0 = pneg %p965_p11  ;;  %p972_p13 = por %p971_p4, %p970_p7 }
  0x5d   : > { %p973_p6 = pnand %p972_p13, %p966_p0 }
  0x5f   : > { %976 = shalt.err (!%p973_p6)
}
  0x60   : > { %826 = dma.hbm_to_vmem [thread:$0]  (!%p1250_p2), %s1246_s8, 256, %s1254_s26, %s1256_s10, %s1067_s11, %s1067_s11, %s1068_s18  }
  0x61   : > { %203 = sbr.rel (%p1147_p8) target bundleno = 567 (0x237), region = 32  ;;  %s1290_s19 = sand.u32 (!%p1147_p8), 1, %s1047_s13  }
  0x62   : > { %s723_s4 = sshll.u32 (!%p1147_p8), %s1290_s19, 4  ;;  %s206_s6 = scalar_lea.sflag (!%p1147_p8), [#allocation3], %s1290_s19 }
  0x63   : > { %s209_s7 = scalar_lea.vmem (!%p1147_p8), [#allocation2], %s723_s4  ;;  %p1386_p7 = scmp.ne.s32.totalorder (!%p1147_p8), %s1380_s22, 0 }
  0x68   : > { %1030 = dma.done.wait (%p1386_p7), %s206_s6, 256  }
  0x69   : > { %1032 = vsyncadd (%p1386_p7), %s206_s6, 4294967040  ;;  %p1387_p12 = scmp.ne.s32.totalorder %s1378_s20, 0 }
  0x6b   : > { %1034 = dma.done.wait (%p1387_p12), [#allocation6], 1024  }
  0x6c   : > { %1036 = vsyncadd (%p1387_p12), [#allocation6], 4294966272  ;;  %vm246_vm0 = vcmask 130048   ;;  %v242_v0 = vld [vmem:[%s209_s7] sm:$0xff]  ;;  %v243_v1 = vld [vmem:[%s209_s7 + $0x8] sm:$0xff]  ;;  %s726_s20 = sshll.u32 %s1290_s19, 5 }
  0x6d   : > { %v244_v2 = vld [vmem:[#allocation5] sm:$0xff]  ;;  %v788_v3 = vpack.c.bf16 %v243_v1, %v242_v0  ;;  %v329_v5 = vld [vmem:[#allocation7 + $0x8] sm:$0xff]  ;;  %v412_v8 = vld [vmem:[#allocation5 + $0x10] sm:$0xff]  ;;  %s239_s22 = scalar_lea.vmem [#allocation8], %s726_s20  ;;  %s743_s11 = sshll.u32 %s1055_s15, 9 }
  0x6e   : > { %764 = vmatprep.mubr.msk.f32.mxu0 %vm246_vm0, %v244_v2  ;;  %v328_v4 = vld [vmem:[#allocation7] sm:$0xff]  ;;  %v245_v7 = vld [vmem:[#allocation5 + $0x8] sm:$0xff]  ;;  %v413_v9 = vld [vmem:[#allocation5 + $0x18] sm:$0xff]  ;;  %s608_s24 = sshll.u32 %s239_s22, 4  ;;  %s1318_s26 = scalar_lea.hbm %s1373_s3, %s743_s11  ;;  %s1312_s24 = int_to_ptr.vmem [resolvable:$true] %s608_s24 }
  0x6f   : > { %789 = vmatprep.subr.bf16.mxu0 %v788_v3  ;;  %v792_v6 = vpack.c.bf16 %v329_v5, %v328_v4  ;;  %v496_v10 = vld [vmem:[#allocation7 + $0x10] sm:$0xff]  ;;  %v497_v11 = vld [vmem:[#allocation7 + $0x18] sm:$0xff]  ;;  %s593_s15 = scalar_lea.sflag [#allocation4], %s1290_s19  ;;  %s977_s9 = scalar_lea.vmem %s1312_s24, 512 }
  0x70   : > { %791 = vmatpush3.bf16.msra.mxu0 %v788_v3  ;;  %v800_v12 = vpack.c.bf16 %v497_v11, %v496_v10  ;;  %p978_p8 = scmp.ne.s32.totalorder %s1312_s24, %s977_s9  ;;  %p1388_p2 = scmp.ne.s32.totalorder %s1384_s25, 0 }
  0x71   : > { %797 = vmatprep.subr.bf16.mxu0 %v788_v3  ;;  %793 = vmatprep.subr.bf16.mxu1 %v792_v6  ;;  %s1070_s10 = smov [#allocation8]  }
  0x72   : > { %795 = vmatpush3.bf16.msra.mxu1 %v792_v6  ;;  %p979_p1 = pnand %p978_p8, %p1388_p2  ;;  %s981_s30 = sshll.u32 %s1070_s10, 4  ;;  %s982_s30 = int_to_ptr.vmem [resolvable:$false] %s981_s30 }
  0x73   : > { %765 = vmatmul.mubr.msk.f32.vlgmr.msra.gmra.mrb[0].mxu0 %vm246_vm0, %v245_v7  ;;  %801 = vmatprep.subr.bf16.mxu1 %v800_v12  ;;  %s983_s21 = scalar_lea.vmem %s982_s30, 1024  ;;  %p984_p3 = scmp.lt.s32.totalorder %s1312_s24, %s982_s30 }
  0x74   : > { %799 = vmatpush3.bf16.msra.mxu0 %v788_v3  ;;  %778 = vmatprep.mubr.msk.f32.mxu0 %vm246_vm0, %v412_v8  ;;  %p980_p10 = pneg %p979_p1  ;;  %p985_p5 = scmp.lt.s32.totalorder %s983_s21, %s977_s9 }
  0x76   : > { %p986_p9 = por %p985_p5, %p984_p3 }
  0x77   : > { %779 = vmatmul.mubr.msk.f32.vlgmr.msra.gmra.mrb[2].mxu0 %vm246_vm0, %v413_v9 }
  0x78   : > { %p987_p11 = pnand %p986_p9, %p980_p10 }
 0x146   : > { %v766_v13 = vpop.f32.mrb[0].mxu0 }
 0x147   : > { %v319_v14 = vpop.f32.mrb[1].mxu0 }
 0x148   : > { %771 = vmatprep.mubr.msk.f32.mxu1 %vm246_vm0, %v319_v14 }
 0x149   : > { %772 = vmatmul.mubr.msk.f32.vlgmr.msra.gmra.mrb[0].mxu1 %vm246_vm0, %v766_v13 }
 0x14a   : > { %v780_v15 = vpop.f32.mrb[2].mxu0  ;;  %803 = vmatpush3.bf16.msra.mxu1 %v800_v12 }
 0x14b   : > { %v486_v16 = vpop.f32.mrb[3].mxu0 }
 0x14c   : > { %785 = vmatprep.mubr.msk.f32.mxu1 %vm246_vm0, %v486_v16 }
 0x14d   : > { %786 = vmatmul.mubr.msk.f32.vlgmr.msra.gmra.mrb[2].mxu1 %vm246_vm0, %v780_v15 }
 0x21c   : > { %v773_v17 = vpop.f32.mrb[0].mxu1 }
 0x21d   : > { %v402_v18 = vpop.f32.mrb[1].mxu1  ;;  %v580_v20 = vmul.f32 1.25, %v773_v17 }
 0x21e   : > { %v579_v23 = vmul.f32 1.25, %v402_v18 }
 0x220   : > { %v787_v19 = vpop.f32.mrb[2].mxu1 }
 0x221   : > { %v582_v21 = vmul.f32 -1.25, %v787_v19  ;;  %v570_v22 = vpop.f32.mrb[3].mxu1 }
 0x222   : > { %v581_v24 = vmul.f32 -1.25, %v570_v22 }
 0x223   : > { %v584_v25 = vadd.f32 %v582_v21, %v580_v20 }
 0x224   : > { %v583_v26 = vadd.f32 %v581_v24, %v579_v23 }
 0x225   : > { %586 = vst.msk [vmem:[%s239_s22 + $0x8] sm:$0xff] %vm246_vm0, %v584_v25  ;;  %v588_v27 = vsub.f32 0.0, %v584_v25 }
 0x226   : > { %585 = vst.msk [vmem:[%s239_s22] sm:$0xff] %vm246_vm0, %v583_v26  ;;  %v587_v28 = vsub.f32 0.0, %v583_v26 }
 0x227   : > { %736 = vst.msk [vmem:[%s239_s22 + $0x18] sm:$0xff] %vm246_vm0, %v588_v27 }
 0x228   : > { %735 = vst.msk [vmem:[%s239_s22 + $0x10] sm:$0xff] %vm246_vm0, %v587_v28 }
 0x229   : > { %990 = shalt.err (!%p987_p11)
}
 0x22a   : > { %s991_s28 = scalar_lea.hbm %s1318_s26, 512  ;;  %s995_s6 = scalar_lea.hbm %s1373_s3, 1024 }
 0x22b   : > { %p992_p0 = scmp.ne.s32.totalorder %s1318_s26, %s991_s28  ;;  %p996_p6 = scmp.lt.u32.totalorder %s1318_s26, %s1373_s3 }
 0x22c   : > { %p997_p7 = scmp.lt.u32.totalorder %s995_s6, %s991_s28  ;;  %p999_p8 = scmp.lt.u32.totalorder %s991_s28, %s1318_s26 }
 0x22d   : > { %p993_p4 = pnand %p992_p0, %p1388_p2 }
 0x22e   : > { %p998_p12 = por %p997_p7, %p996_p6 }
 0x22f   : > { %p994_p13 = pneg %p993_p4 }
 0x230   : > { %p1000_p1 = por %p999_p8, %p998_p12 }
 0x232   : > { %p1001_p10 = pnand %p1000_p1, %p994_p13 }
 0x234   : > { %1004 = shalt.err (!%p1001_p10)
}
 0x235   : > { %s1071_s22 = smov 128   ;;  %s1072_s11 = smov 8  }
 0x236   : > { %814 = dma.vmem_to_hbm [thread:$0]  (%p1388_p2), %s1312_s24, 512, %s1318_s26, %s593_s15, %s1071_s22, %s1071_s22, %s1072_s11  }
 0x237 PF: > { %s623_s18 = sand.u32 1, %s1043_s12   ;;  %p1389_p3 = scmp.ne.s32.totalorder %s1381_s23, 0 }
 0x238   : > { %p1390_p5 = scmp.ge.s32.totalorder %s1063_s17, 2  ;;  %s624_s8 = scalar_lea.sflag [#allocation4], %s623_s18 }
 0x23a   : > { %p828_p9 = pnand %p1390_p5, %p1389_p3 }
 0x23c   : > { %1038 = dma.done.wait (!%p828_p9), %s624_s8, 512  }
 0x23d   : > { %1040 = vsyncadd (!%p828_p9), %s624_s8, 4294966784  ;;  %s20_s17 = sadd.s32 1, %s1063_s17   ;;  %s1391_s12 = smov %s1047_s13 }
 0x23e   : > { %p17_p11 = scmp.ge.s32.totalorder %s20_s17, 4   ;;  %s1392_s13 = smov %s1051_s14 }
 0x23f   : > { %s1393_s14 = smov %s1241_s5  ;;  %s1394_s15 = smov %s1059_s16 }
 0x240   : > { %s1395_s16 = smov %s1397_s27  ;;  %19 = sbr.rel (!%p17_p11) target bundleno = 7 (0x7), region = 89 }
 0x247   :  { %629 = vsyncpa [#allocation3], 1 }
 0x248   :  { %631 = vsyncpa [#allocation3 + $0x1], 1 }
 0x249   :  { %632 = vsyncpa [#allocation6], 1 }
 0x24a   :  { %633 = vsyncpa [#allocation4], 1 }
 0x24b   :  { %635 = vsyncpa [#allocation4 + $0x1], 1 }

</bundles_post_ra>
